<compile_context>
chip_gen: v5e
topology: v5e:2x2
jax: 0.10.0
libtpu: 0.0.40
codegen_flags: <defaults>
</compile_context>

<pallas_src>
import functools

import jax
import jax.numpy as jnp
from jax.experimental import pallas as pl
from jax.experimental.pallas import tpu as pltpu

# ----------------------------- model hyper-params ---------------------------
N = 16            # number of graph nodes
IN_FEATS = 8
HID_FEATS = 32
OUT_FEATS = 16
K = 4             # APPNP propagation steps
ALPHA = 0.1       # teleport probability
BATCH = 8         # batch of feature matrices for the batched entry point


# --------------------------- shared kernel compute ---------------------------
def _appnp_compute(x, params_ref, *, in_feats, hid_feats, out_feats, n_nodes):
    """lin1 -> ReLU -> lin2 -> P @ h0, all f32 MXU ops; params sliced from one slab."""
    r1 = in_feats
    r2 = r1 + hid_feats
    r3 = r2 + n_nodes
    w1 = params_ref[0:r1, 0:hid_feats]             # (in, hid)
    w2 = params_ref[r1:r2, 0:out_feats]            # (hid, out)
    p_mat = params_ref[r2:r3, 0:n_nodes]           # (n, n) collapsed propagation
    b1 = params_ref[r3:r3 + 1, 0:hid_feats]        # (1, hid)
    b2 = params_ref[r3 + 1:r3 + 2, 0:out_feats]    # (1, out)

    h = jnp.dot(x, w1, preferred_element_type=jnp.float32) + b1
    h = jnp.maximum(h, 0.0)
    h0 = jnp.dot(h, w2, preferred_element_type=jnp.float32) + b2
    return jnp.dot(p_mat, h0, preferred_element_type=jnp.float32)


def appnp_kernel(x_ref, params_ref, out_ref, *, in_feats, hid_feats, out_feats,
                 n_nodes):
    out_ref[...] = _appnp_compute(
        x_ref[...], params_ref, in_feats=in_feats, hid_feats=hid_feats,
        out_feats=out_feats, n_nodes=n_nodes)


def appnp_batched_kernel(x_ref, params_ref, out_ref, *, in_feats, hid_feats,
                         out_feats, n_nodes):
    out_ref[0] = _appnp_compute(
        x_ref[0], params_ref, in_feats=in_feats, hid_feats=hid_feats,
        out_feats=out_feats, n_nodes=n_nodes)


# ------------------------- per-graph / per-model prep ------------------------
def build_prop_matrix(a_hat, *, k, alpha):
    """Collapse K APPNP steps into one matrix: h_K = P @ h0 (exact reformulation)."""
    n = a_hat.shape[0]
    eye = jnp.eye(n, dtype=jnp.float32)
    p = eye
    for _ in range(k):
        p = (1.0 - alpha) * (a_hat @ p) + alpha * eye
    return p


def prepare_appnp_params(w1, b1, w2, b2, a_hat, *, k, alpha):
    """Pack all parameters + propagation matrix into one f32 slab (one DMA)."""
    in_f, hid = w1.shape
    out_f = w2.shape[1]
    n = a_hat.shape[0]
    p_mat = build_prop_matrix(a_hat, k=k, alpha=alpha)

    rows = in_f + hid + n + 2
    cols = max(hid, out_f, n)
    slab = jnp.zeros((rows, cols), jnp.float32)
    slab = slab.at[0:in_f, 0:hid].set(w1)
    slab = slab.at[in_f:in_f + hid, 0:out_f].set(w2)
    r2 = in_f + hid
    slab = slab.at[r2:r2 + n, 0:n].set(p_mat)
    r3 = r2 + n
    slab = slab.at[r3, 0:hid].set(b1.reshape(-1))
    slab = slab.at[r3 + 1, 0:out_f].set(b2.reshape(-1))
    return slab


# --------------------------------- wrappers ----------------------------------
def appnp_forward(x, params_slab, *, in_feats, hid_feats, out_feats):
    """Single graph feature matrix: un-gridded call, whole-array VMEM refs."""
    n = x.shape[0]
    kernel = functools.partial(appnp_kernel, in_feats=in_feats,
                               hid_feats=hid_feats, out_feats=out_feats, n_nodes=n)
    return pl.pallas_call(
        kernel,
        out_shape=jax.ShapeDtypeStruct((n, out_feats), jnp.float32),
        in_specs=[pl.BlockSpec(memory_space=pltpu.MemorySpace.VMEM),
                  pl.BlockSpec(memory_space=pltpu.MemorySpace.VMEM)],
        out_specs=pl.BlockSpec(memory_space=pltpu.MemorySpace.VMEM),
    )(x, params_slab)


def appnp_forward_batched(xb, params_slab, *, in_feats, hid_feats, out_feats):
    """Batch of feature matrices on the same graph: parallel grid over batch."""
    bsz, n, _ = xb.shape
    rows, cols = params_slab.shape
    kernel = functools.partial(appnp_batched_kernel, in_feats=in_feats,
                               hid_feats=hid_feats, out_feats=out_feats, n_nodes=n)
    return pl.pallas_call(
        kernel,
        out_shape=jax.ShapeDtypeStruct((bsz, n, out_feats), jnp.float32),
        grid=(bsz,),
        in_specs=[pl.BlockSpec((1, n, in_feats), lambda b: (b, 0, 0)),
                  pl.BlockSpec((rows, cols), lambda b: (0, 0))],
        out_specs=pl.BlockSpec((1, n, out_feats), lambda b: (b, 0, 0)),
        compiler_params=pltpu.CompilerParams(dimension_semantics=("parallel",)),
    )(xb, params_slab)


# ----------------------- pure-JAX reference (for checking) ------------------
def appnp_reference(x, w1, b1, w2, b2, a_hat, *, k, alpha):
    h = jnp.maximum(x @ w1 + b1, 0.0)
    h0 = h @ w2 + b2
    h = h0
    for _ in range(k):
        h = (1.0 - alpha) * (a_hat @ h) + alpha * h0
    return h


# ----------------------------------- main ------------------------------------
if __name__ == "__main__":
    key = jax.random.PRNGKey(0)
    k_x, k_w1, k_b1, k_w2, k_b2, k_adj, k_xb = jax.random.split(key, 7)

    # node features
    x = jax.random.normal(k_x, (N, IN_FEATS), dtype=jnp.float32)

    # parameters (deterministic init; Linear weights stored pre-transposed [in, out])
    w1 = jax.random.normal(k_w1, (IN_FEATS, HID_FEATS), dtype=jnp.float32) * 0.1
    b1 = jax.random.normal(k_b1, (1, HID_FEATS), dtype=jnp.float32) * 0.1
    w2 = jax.random.normal(k_w2, (HID_FEATS, OUT_FEATS), dtype=jnp.float32) * 0.1
    b2 = jax.random.normal(k_b2, (1, OUT_FEATS), dtype=jnp.float32) * 0.1

    # deterministic random graph: symmetric 0/1 adjacency, no self-loops
    raw = jax.random.uniform(k_adj, (N, N))
    adj = (raw + raw.T > 1.4).astype(jnp.float32)
    adj = adj * (1.0 - jnp.eye(N, dtype=jnp.float32))

    # DGL-style symmetric normalization with degree clamp(min=1)
    out_deg = jnp.maximum(adj.sum(axis=1), 1.0)   # edges leaving node u
    in_deg = jnp.maximum(adj.sum(axis=0), 1.0)    # edges entering node v
    a_hat = (in_deg ** -0.5)[:, None] * adj.T * (out_deg ** -0.5)[None, :]

    # one-time pack: params + collapsed propagation matrix -> single VMEM slab
    params_slab = prepare_appnp_params(w1, b1, w2, b2, a_hat, k=K, alpha=ALPHA)

    # ---- single graph forward ----
    out = appnp_forward(x, params_slab, in_feats=IN_FEATS, hid_feats=HID_FEATS,
                        out_feats=OUT_FEATS)
    out = jax.block_until_ready(out)
    ref = appnp_reference(x, w1, b1, w2, b2, a_hat, k=K, alpha=ALPHA)
    assert out.shape == (N, OUT_FEATS)
    # all-f32 matmuls -> much tighter than the old bf16 3e-2 tolerance; keep a small
    # margin for MXU f32 pass/association differences vs XLA.
    assert jnp.allclose(out, ref, atol=1e-2, rtol=1e-2), "single-graph mismatch"

    # ---- batched forward (same graph, BATCH feature matrices) ----
    xb = jax.random.normal(k_xb, (BATCH, N, IN_FEATS), dtype=jnp.float32)
    outb = appnp_forward_batched(xb, params_slab, in_feats=IN_FEATS,
                                 hid_feats=HID_FEATS, out_feats=OUT_FEATS)
    outb = jax.block_until_ready(outb)
    refb = jax.vmap(lambda xi: appnp_reference(xi, w1, b1, w2, b2, a_hat,
                                               k=K, alpha=ALPHA))(xb)
    assert outb.shape == (BATCH, N, OUT_FEATS)
    assert jnp.allclose(outb, refb, atol=1e-2, rtol=1e-2), "batched mismatch"

    print("KERNEL_OK")
</pallas_src>

<mosaic_0001>
module attributes {stable_mosaic.version = 11 : i64} {
  func.func @appnp_kernel(%arg0: memref<16x8xf32, #tpu.memory_space<vmem>>, %arg1: memref<58x32xf32, #tpu.memory_space<vmem>>, %arg2: memref<16x16xf32, #tpu.memory_space<vmem>>) attributes {dimension_semantics = [], scalar_prefetch = 0 : i64, scratch_operands = 0 : i64, tpu.core_type = #tpu.core_type<tc>} {
    %c0 = arith.constant 0 : index
    %c0_0 = arith.constant 0 : index
    %0 = vector.load %arg0[%c0, %c0_0] : memref<16x8xf32, #tpu.memory_space<vmem>>, vector<16x8xf32>
    %c0_1 = arith.constant 0 : index
    %c0_2 = arith.constant 0 : index
    %1 = vector.load %arg1[%c0_1, %c0_2] : memref<58x32xf32, #tpu.memory_space<vmem>>, vector<8x32xf32>
    %c8 = arith.constant 8 : index
    %c0_3 = arith.constant 0 : index
    %2 = vector.load %arg1[%c8, %c0_3] : memref<58x32xf32, #tpu.memory_space<vmem>>, vector<32x16xf32>
    %c40 = arith.constant 40 : index
    %c0_4 = arith.constant 0 : index
    %3 = vector.load %arg1[%c40, %c0_4] : memref<58x32xf32, #tpu.memory_space<vmem>>, vector<16x16xf32>
    %c56 = arith.constant 56 : index
    %c0_5 = arith.constant 0 : index
    %4 = vector.load %arg1[%c56, %c0_5] : memref<58x32xf32, #tpu.memory_space<vmem>>, vector<1x32xf32>
    %c57 = arith.constant 57 : index
    %c0_6 = arith.constant 0 : index
    %5 = vector.load %arg1[%c57, %c0_6] : memref<58x32xf32, #tpu.memory_space<vmem>>, vector<1x16xf32>
    %cst = arith.constant dense<0.000000e+00> : vector<16x32xf32>
    %6 = tpu.matmul %0, %1, %cst {dimension_numbers = #tpu.dot_dimension_numbers<[1], [0], [0], [1], [0, 0, 1, 1], [], []>} : vector<16x8xf32>, vector<8x32xf32>, vector<16x32xf32> -> vector<16x32xf32>
    %7 = vector.broadcast %4 : vector<1x32xf32> to vector<16x32xf32>
    %8 = arith.addf %6, %7 : vector<16x32xf32>
    %cst_7 = arith.constant 0.000000e+00 : f32
    %9 = vector.broadcast %cst_7 : f32 to vector<16x32xf32>
    %10 = arith.maximumf %8, %9 : vector<16x32xf32>
    %cst_8 = arith.constant dense<0.000000e+00> : vector<16x16xf32>
    %11 = tpu.matmul %10, %2, %cst_8 {dimension_numbers = #tpu.dot_dimension_numbers<[1], [0], [0], [1], [0, 0, 1, 1], [], []>} : vector<16x32xf32>, vector<32x16xf32>, vector<16x16xf32> -> vector<16x16xf32>
    %12 = vector.broadcast %5 : vector<1x16xf32> to vector<16x16xf32>
    %13 = arith.addf %11, %12 : vector<16x16xf32>
    %cst_9 = arith.constant dense<0.000000e+00> : vector<16x16xf32>
    %14 = tpu.matmul %3, %13, %cst_9 {dimension_numbers = #tpu.dot_dimension_numbers<[1], [0], [0], [1], [0, 0, 1, 1], [], []>} : vector<16x16xf32>, vector<16x16xf32>, vector<16x16xf32> -> vector<16x16xf32>
    %c0_10 = arith.constant 0 : index
    %c0_11 = arith.constant 0 : index
    %15 = vector.load %arg2[%c0_10, %c0_11] : memref<16x16xf32, #tpu.memory_space<vmem>>, vector<16x16xf32>
    tpu.vector_store %arg2[%c0_10, %c0_11], %14 {strides = array<i32>} : memref<16x16xf32, #tpu.memory_space<vmem>>, vector<16x16xf32>,
    return
  }
}

</mosaic_0001>

<bundles_post_ra>
// kernel: tpu_custom_call.1
= control target key start
LH: loop header
LB: loop body
LE: loop exit
PB: predicated region body
PF: predicated region fallthrough
CT: control target
= control target key end

     0   :  { %vm24_vm0 = vcmask 64512   ;;  %s232_s0 = inlined_call_operand.vmem [shape: f32[16,8], index: 0, kind: input, shape index: {}]   ;;  %s233_s1 = inlined_call_operand.vmem [shape: f32[58,32], index: 1, kind: input, shape index: {}]   ;;  %s234_s2 = inlined_call_operand.hbm [shape: f32[16,16], index: 2, kind: output, shape index: {}]  }
   0x1   :  { %v14_v0 = vld [vmem:[%s233_s1] sm:$0xff] }
   0x2   :  { %v12_v1 = vld [vmem:[%s232_s0] sm:$0xff]  ;;  %46 = vmatpush.msra.mxu0 %v14_v0 }
   0x3   :  { %v18_v2 = vld [vmem:[%s233_s1 + $0x20] sm:$0xff]  ;;  %137 = vmatmul.msk.f32.vlgmr.msra.gmra.mxu0 %vm24_vm0, %v12_v1 }
   0x4   :  { %76 = vmatpush.msra.mxu1 %v18_v2 }
   0x5   :  { %7 = vsyncpa [#allocation3], 0  ;;  %143 = vmatpush.msra.mxu3 %v18_v2  ;;  %v13_v3 = vld [vmem:[%s232_s0 + $0x8] sm:$0xff]  ;;  %v17_v4 = vld [vmem:[%s233_s1 + $0x18] sm:$0xff]  ;;  %vm57_vm1 = vcmask 261120   ;;  %vm87_vm2 = vcmask 130048  }
   0x6   :  { %77 = vmatpush.msra.mxu1 %v17_v4  ;;  %v16_v5 = vld [vmem:[%s233_s1 + $0x10] sm:$0xff]  ;;  %v15_v6 = vld [vmem:[%s233_s1 + $0x8] sm:$0xff]  ;;  %v150_v7 = vld [vmem:[%s233_s1 + $0x38] ss:$0 sm:$0xff]  ;;  %s178_s30 = smov [#allocation2]   ;;  %s125_s6 = sshll.u32 %s234_s2, 4  ;;  %s126_s6 = int_to_ptr.hbm [resolvable:$true] %s125_s6 }
   0x7   :  { %144 = vmatpush.msra.mxu3 %v17_v4  ;;  %v151_v14 = vld [vmem:[%s233_s1 + $0x39] ss:$0 sm:$0xff]  ;;  %v19_v19 = vld [vmem:[%s233_s1 + $0x28] sm:$0xff]  ;;  %v20_v20 = vld [vmem:[%s233_s1 + $0x30] sm:$0xff]  ;;  %s123_s3 = sshll.u32 %s178_s30, 4  ;;  %s179_s7 = smov 128   ;;  %s124_s3 = int_to_ptr.vmem [resolvable:$true] %s123_s3 }
   0x8   :  { %78 = vmatpush.msra.mxu1 %v16_v5  ;;  %s180_s8 = smov 8  }
   0x9   :  { %145 = vmatpush.msra.mxu3 %v16_v5 }
   0xa   :  { %79 = vmatpush.msra.mxu1 %v15_v6 }
   0xb   :  { %138 = vmatmul.msk.f32.gmra.mxu0 %vm24_vm0, %v13_v3  ;;  %146 = vmatpush.msra.mxu3 %v15_v6 }
  0x80   :  { %v48_v8 = vpop.f32.mrf.mxu0 }
  0x81   :  { %v49_v9 = vadd.f32 %v150_v7, %v48_v8 }
  0x83   :  { %v54_v10 = vmax.f32 %v49_v9, 0.0 }
  0x85   :  { %139 = vmatmul.msk.f32.vlgmr.msra.gmra.mxu1 %vm57_vm1, %v54_v10 }
  0x88   :  { %v51_v11 = vpop.f32.mrf.mxu0 }
  0x89   :  { %v52_v12 = vadd.f32 %v150_v7, %v51_v11 }
  0x8b   :  { %v55_v13 = vmax.f32 %v52_v12, 0.0 }
  0x8d   :  { %140 = vmatmul.msk.f32.vlgmr.msra.gmra.mxu3 %vm57_vm1, %v55_v13 }
 0x102   :  { %v81_v15 = vpop.f32.mrf.mxu1 }
 0x103   :  { %v82_v18 = vadd.f32 %v151_v14, %v81_v15 }
 0x110   :  { %v84_v16 = vpop.f32.mrf.mxu3 }
 0x111   :  { %v85_v17 = vadd.f32 %v151_v14, %v84_v16 }
 0x113   :  { %108 = vmatpush.msra.mxu2 %v85_v17 }
 0x115   :  { %109 = vmatpush.msra.mxu2 %v82_v18 }
 0x116   :  { %141 = vmatmul.msk.f32.vlgmr.msra.gmra.mxu2 %vm87_vm2, %v19_v19 }
 0x11e   :  { %142 = vmatmul.msk.f32.gmra.mxu2 %vm87_vm2, %v20_v20 }
 0x199   :  { %v111_v21 = vpop.f32.mrf.mxu2 }
 0x19a   :  { %117 = vst.msk [vmem:[#allocation2] sm:$0xff] %vm87_vm2, %v111_v21 }
 0x1a1   :  { %v114_v22 = vpop.f32.mrf.mxu2 }
 0x1a2   :  { %118 = vst.msk [vmem:[#allocation2 + $0x8] sm:$0xff] %vm87_vm2, %v114_v22 }
 0x1a3   :  { %131 = dma.vmem_to_hbm [thread:$0]  %s124_s3, 256, %s126_s6, [#allocation3], %s179_s7, %s179_s7, %s180_s8  }
 0x1a4   :  { %176 = dma.done.wait [#allocation3], 256  }
 0x1a5   :  { %177 = vsyncadd [#allocation3], 4294967040 }
 0x1a6   :  { %136 = vsyncpa [#allocation3], 1 }

</bundles_post_ra>
